<compile_context>
chip_gen: v6e
topology: v6e:2x2x1
jax: 0.10.0
libtpu: 0.0.40
codegen_flags: <defaults>
</compile_context>

<pallas_src>
import jax
import jax.numpy as jnp
from jax.experimental import pallas as pl
from jax.experimental.pallas import tpu as pltpu

T_TEMP = 2.0
SCALE = 1.0
SCALES = SCALE * SCALE * T_TEMP * T_TEMP  # scale*scale*T*T


def _make_distill_kernel(B, TB, inv_T, final_scale):
    """final_scale = (scale^2 * T^2) / B ; lmd is read from the prefetch ref."""
    ragged = (B % TB) != 0

    def kernel(lmd_ref, y_ref, t_ref, m_ref, yr_ref, o_ref):
        pid = pl.program_id(0)
        nprog = pl.num_programs(0)

        @pl.when(pid == 0)
        def _init():
            o_ref[...] = jnp.zeros_like(o_ref)

        y = y_ref[...].astype(jnp.float32)
        ts = t_ref[...].astype(jnp.float32)
        msk = m_ref[...].astype(jnp.float32)
        yr = yr_ref[...].astype(jnp.float32)

        if ragged:
            # Zero out padded rows of the last tile (select, so OOB garbage
            # never reaches exp/log). A zero row contributes exactly 0 KL.
            row = pid * TB + jax.lax.broadcasted_iota(jnp.int32, (TB, 1), 0)
            valid = row < B
            y = jnp.where(valid, y, 0.0)
            ts = jnp.where(valid, ts, 0.0)
            msk = jnp.where(valid, msk, 0.0)
            yr = jnp.where(valid, yr, 0.0)

        def kl_rows(z_s, z_t):
            # per-row KL( softmax(z_t) || softmax(z_s) )
            #   = sum_c q*(z_t - z_s) + lse_s - lse_t
            m_s = jnp.max(z_s, axis=1, keepdims=True)
            lse_s = m_s + jnp.log(
                jnp.sum(jnp.exp(z_s - m_s), axis=1, keepdims=True))
            m_t = jnp.max(z_t, axis=1, keepdims=True)
            e_t = jnp.exp(z_t - m_t)
            sum_t = jnp.sum(e_t, axis=1, keepdims=True)
            lse_t = m_t + jnp.log(sum_t)
            num = jnp.sum(e_t * (z_t - z_s), axis=1, keepdims=True)
            return num * pl.reciprocal(sum_t, approx=True) + (lse_s - lse_t)

        sm = msk * inv_T
        smc = (1.0 - msk) * inv_T
        kl1 = kl_rows(y * sm, ts * sm)
        kl2 = kl_rows(y * smc, yr * smc)

        o_ref[...] = o_ref[...] + jnp.sum(kl1 + kl2)

        @pl.when(pid == nprog - 1)
        def _finalize():
            o_ref[...] = o_ref[...] * (lmd_ref[0] * final_scale)

    return kernel


def _choose_block_rows(B, C, itemsize=4, budget_bytes=12 << 20):
    """Largest row-tile such that 4 double-buffered (TB, C) streams fit budget."""
    per_row = 4 * 2 * C * itemsize
    tb = max(1, budget_bytes // per_row)
    if B <= 8:
        return B
    tb = min(tb, B)
    tb = max(8, (tb // 8) * 8)   # keep sublane-aligned
    return min(tb, B)


def distillation_loss(y, teacher_scores, msk, lmd, yrand, *,
                      T=T_TEMP, scale=SCALE, block_rows=None,
                      vmem_limit_bytes=None):
    """Pallas TPU implementation of Distillation_Loss.forward. Returns a scalar."""
    B, C = y.shape
    if block_rows is None:
        block_rows = _choose_block_rows(B, C)
    block_rows = min(block_rows, B)
    grid = (pl.cdiv(B, block_rows),)

    scales = scale * scale * T * T
    kernel = _make_distill_kernel(B, block_rows, 1.0 / T, scales / B)

    lmd_arr = jnp.asarray([lmd], dtype=jnp.float32)
    tile_spec = pl.BlockSpec((block_rows, C), lambda i, lmd_ref: (i, 0))

    compiler_params = pltpu.CompilerParams(
        dimension_semantics=("arbitrary",),   # reduction into resident output
        vmem_limit_bytes=vmem_limit_bytes,
    )

    out = pl.pallas_call(
        kernel,
        out_shape=jax.ShapeDtypeStruct((1, 1), jnp.float32),
        grid_spec=pltpu.PrefetchScalarGridSpec(
            num_scalar_prefetch=1,            # lmd -> SMEM
            grid=grid,
            in_specs=[tile_spec, tile_spec, tile_spec, tile_spec],
            out_specs=pl.BlockSpec((1, 1), lambda i, lmd_ref: (0, 0)),
        ),
        compiler_params=compiler_params,
    )(lmd_arr, y, teacher_scores, msk, yrand)
    return out[0, 0]


def _reference_loss(y, teacher_scores, msk, lmd, yrand):
    """Pure-JAX reference (mirrors torch semantics)."""
    B = y.shape[0]

    def kl_batchmean(student_logits, teacher_logits):
        logp = jax.nn.log_softmax(student_logits, axis=1)
        q = jax.nn.softmax(teacher_logits, axis=1)
        return jnp.sum(q * (jnp.log(q) - logp)) / B

    a1 = kl_batchmean(y * msk / T_TEMP, teacher_scores * msk / T_TEMP)
    a2 = kl_batchmean(y * (1.0 - msk) / T_TEMP, yrand * (1.0 - msk) / T_TEMP)
    return (a1 + a2) * lmd * SCALES


if __name__ == "__main__":
    key = jax.random.PRNGKey(0)
    k1, k2, k3, k4 = jax.random.split(key, 4)

    # Small shapes: lane-dense class dim (multiple of 128), ragged batch to
    # exercise multi-step accumulation + last-tile masking (grid of 3, TB=8).
    B, C = 20, 256
    y = jax.random.normal(k1, (B, C), dtype=jnp.float32)
    teacher_scores = jax.random.normal(k2, (B, C), dtype=jnp.float32)
    yrand = jax.random.normal(k3, (B, C), dtype=jnp.float32)
    msk = jax.random.bernoulli(k4, p=0.5, shape=(B, C)).astype(jnp.float32)
    lmd = 0.7

    loss = distillation_loss(y, teacher_scores, msk, lmd, yrand, block_rows=8)
    loss = jax.block_until_ready(loss)

    ref = _reference_loss(y, teacher_scores, msk, lmd, yrand)
    assert jnp.allclose(loss, ref, atol=2e-3, rtol=2e-3), (loss, ref)

    print("KERNEL_OK")
</pallas_src>

<mosaic_0001>
module attributes {stable_mosaic.version = 11 : i64} {
  func.func @kernel(%arg0: i32, %arg1: memref<1xf32, #tpu.memory_space<smem>>, %arg2: memref<8x256xf32, #tpu.memory_space<vmem>>, %arg3: memref<8x256xf32, #tpu.memory_space<vmem>>, %arg4: memref<8x256xf32, #tpu.memory_space<vmem>>, %arg5: memref<8x256xf32, #tpu.memory_space<vmem>>, %arg6: memref<1x1xf32, #tpu.memory_space<vmem>>) attributes {dimension_semantics = [#tpu.dimension_semantics<arbitrary>], iteration_bounds = array<i64: 3>, scalar_prefetch = 1 : i64, scratch_operands = 0 : i64, tpu.core_type = #tpu.core_type<tc>, window_params = [{transform_indices = @transform_0, window_bounds = array<i64: 8, 256>}, {transform_indices = @transform_1, window_bounds = array<i64: 8, 256>}, {transform_indices = @transform_2, window_bounds = array<i64: 8, 256>}, {transform_indices = @transform_3, window_bounds = array<i64: 8, 256>}, {pipeline_mode = #tpu.pipeline_mode<synchronous>, transform_indices = @transform_4, window_bounds = array<i64: 1, 1>}]} {
    %c0_i32 = arith.constant 0 : i32
    %0 = arith.cmpi eq, %arg0, %c0_i32 : i32
    %1 = arith.extui %0 : i1 to i32
    %c0_i32_0 = arith.constant 0 : i32
    %2 = arith.cmpi ne, %1, %c0_i32_0 : i32
    scf.if %2 {
      %cst_30 = arith.constant 0.000000e+00 : f32
      %103 = vector.broadcast %cst_30 : f32 to vector<1x1xf32>
      %c0_31 = arith.constant 0 : index
      %c0_32 = arith.constant 0 : index
      %104 = vector.load %arg6[%c0_31, %c0_32] : memref<1x1xf32, #tpu.memory_space<vmem>>, vector<1x1xf32>
      tpu.vector_store %arg6[%c0_31, %c0_32], %103 {strides = array<i32>} : memref<1x1xf32, #tpu.memory_space<vmem>>, vector<1x1xf32>,
    } else {
    }
    %c0 = arith.constant 0 : index
    %c0_1 = arith.constant 0 : index
    %3 = vector.load %arg2[%c0, %c0_1] : memref<8x256xf32, #tpu.memory_space<vmem>>, vector<8x256xf32>
    %c0_2 = arith.constant 0 : index
    %c0_3 = arith.constant 0 : index
    %4 = vector.load %arg3[%c0_2, %c0_3] : memref<8x256xf32, #tpu.memory_space<vmem>>, vector<8x256xf32>
    %c0_4 = arith.constant 0 : index
    %c0_5 = arith.constant 0 : index
    %5 = vector.load %arg4[%c0_4, %c0_5] : memref<8x256xf32, #tpu.memory_space<vmem>>, vector<8x256xf32>
    %c0_6 = arith.constant 0 : index
    %c0_7 = arith.constant 0 : index
    %6 = vector.load %arg5[%c0_6, %c0_7] : memref<8x256xf32, #tpu.memory_space<vmem>>, vector<8x256xf32>
    %c8_i32 = arith.constant 8 : i32
    %7 = arith.muli %arg0, %c8_i32 : i32
    %8 = tpu.iota {dimensions = array<i32: 0>} : vector<8x1xi32>
    %9 = vector.broadcast %7 : i32 to vector<8x1xi32>
    %10 = arith.addi %9, %8 : vector<8x1xi32>
    %c20_i32 = arith.constant 20 : i32
    %11 = vector.broadcast %c20_i32 : i32 to vector<8x1xi32>
    %12 = arith.cmpi slt, %10, %11 : vector<8x1xi32>
    %cst = arith.constant 0.000000e+00 : f32
    %13 = vector.shape_cast %12 : vector<8x1xi1> to vector<8x1xi1>
    %14 = vector.broadcast %13 : vector<8x1xi1> to vector<8x256xi1>
    %15 = vector.broadcast %cst : f32 to vector<8x256xf32>
    %16 = arith.select %14, %3, %15 : vector<8x256xi1>, vector<8x256xf32>
    %cst_8 = arith.constant 0.000000e+00 : f32
    %17 = vector.shape_cast %12 : vector<8x1xi1> to vector<8x1xi1>
    %18 = vector.broadcast %17 : vector<8x1xi1> to vector<8x256xi1>
    %19 = vector.broadcast %cst_8 : f32 to vector<8x256xf32>
    %20 = arith.select %18, %4, %19 : vector<8x256xi1>, vector<8x256xf32>
    %cst_9 = arith.constant 0.000000e+00 : f32
    %21 = vector.shape_cast %12 : vector<8x1xi1> to vector<8x1xi1>
    %22 = vector.broadcast %21 : vector<8x1xi1> to vector<8x256xi1>
    %23 = vector.broadcast %cst_9 : f32 to vector<8x256xf32>
    %24 = arith.select %22, %5, %23 : vector<8x256xi1>, vector<8x256xf32>
    %cst_10 = arith.constant 0.000000e+00 : f32
    %25 = vector.shape_cast %12 : vector<8x1xi1> to vector<8x1xi1>
    %26 = vector.broadcast %25 : vector<8x1xi1> to vector<8x256xi1>
    %27 = vector.broadcast %cst_10 : f32 to vector<8x256xf32>
    %28 = arith.select %26, %6, %27 : vector<8x256xi1>, vector<8x256xf32>
    %cst_11 = arith.constant 5.000000e-01 : f32
    %29 = vector.broadcast %cst_11 : f32 to vector<8x256xf32>
    %30 = arith.mulf %24, %29 : vector<8x256xf32>
    %cst_12 = arith.constant 1.000000e+00 : f32
    %31 = vector.broadcast %cst_12 : f32 to vector<8x256xf32>
    %32 = arith.subf %31, %24 : vector<8x256xf32>
    %cst_13 = arith.constant 5.000000e-01 : f32
    %33 = vector.broadcast %cst_13 : f32 to vector<8x256xf32>
    %34 = arith.mulf %32, %33 : vector<8x256xf32>
    %35 = arith.mulf %16, %30 : vector<8x256xf32>
    %36 = arith.mulf %20, %30 : vector<8x256xf32>
    %cst_14 = arith.constant dense<0xFF800000> : vector<8xf32>
    %37 = vector.multi_reduction <maximumf>, %35, %cst_14 [1] : vector<8x256xf32> to vector<8xf32>
    %38 = vector.shape_cast %37 : vector<8xf32> to vector<8x1xf32>
    %39 = vector.broadcast %38 : vector<8x1xf32> to vector<8x256xf32>
    %40 = arith.subf %35, %39 : vector<8x256xf32>
    %41 = math.exp %40 : vector<8x256xf32>
    %cst_15 = arith.constant dense<0.000000e+00> : vector<8xf32>
    %42 = vector.multi_reduction <add>, %41, %cst_15 [1] : vector<8x256xf32> to vector<8xf32>
    %43 = vector.shape_cast %42 : vector<8xf32> to vector<8x1xf32>
    %44 = math.log %43 : vector<8x1xf32>
    %45 = arith.addf %38, %44 : vector<8x1xf32>
    %cst_16 = arith.constant dense<0xFF800000> : vector<8xf32>
    %46 = vector.multi_reduction <maximumf>, %36, %cst_16 [1] : vector<8x256xf32> to vector<8xf32>
    %47 = vector.shape_cast %46 : vector<8xf32> to vector<8x1xf32>
    %48 = vector.broadcast %47 : vector<8x1xf32> to vector<8x256xf32>
    %49 = arith.subf %36, %48 : vector<8x256xf32>
    %50 = math.exp %49 : vector<8x256xf32>
    %cst_17 = arith.constant dense<0.000000e+00> : vector<8xf32>
    %51 = vector.multi_reduction <add>, %50, %cst_17 [1] : vector<8x256xf32> to vector<8xf32>
    %52 = vector.shape_cast %51 : vector<8xf32> to vector<8x1xf32>
    %53 = math.log %52 : vector<8x1xf32>
    %54 = arith.addf %47, %53 : vector<8x1xf32>
    %55 = arith.subf %36, %35 : vector<8x256xf32>
    %56 = arith.mulf %50, %55 : vector<8x256xf32>
    %cst_18 = arith.constant dense<0.000000e+00> : vector<8xf32>
    %57 = vector.multi_reduction <add>, %56, %cst_18 [1] : vector<8x256xf32> to vector<8xf32>
    %58 = vector.shape_cast %57 : vector<8xf32> to vector<8x1xf32>
    %59 = tpu.reciprocal %52 {approx = true} : vector<8x1xf32> -> vector<8x1xf32>
    %60 = arith.mulf %58, %59 : vector<8x1xf32>
    %61 = arith.subf %45, %54 : vector<8x1xf32>
    %62 = arith.addf %60, %61 : vector<8x1xf32>
    %63 = arith.mulf %16, %34 : vector<8x256xf32>
    %64 = arith.mulf %28, %34 : vector<8x256xf32>
    %cst_19 = arith.constant dense<0xFF800000> : vector<8xf32>
    %65 = vector.multi_reduction <maximumf>, %63, %cst_19 [1] : vector<8x256xf32> to vector<8xf32>
    %66 = vector.shape_cast %65 : vector<8xf32> to vector<8x1xf32>
    %67 = vector.broadcast %66 : vector<8x1xf32> to vector<8x256xf32>
    %68 = arith.subf %63, %67 : vector<8x256xf32>
    %69 = math.exp %68 : vector<8x256xf32>
    %cst_20 = arith.constant dense<0.000000e+00> : vector<8xf32>
    %70 = vector.multi_reduction <add>, %69, %cst_20 [1] : vector<8x256xf32> to vector<8xf32>
    %71 = vector.shape_cast %70 : vector<8xf32> to vector<8x1xf32>
    %72 = math.log %71 : vector<8x1xf32>
    %73 = arith.addf %66, %72 : vector<8x1xf32>
    %cst_21 = arith.constant dense<0xFF800000> : vector<8xf32>
    %74 = vector.multi_reduction <maximumf>, %64, %cst_21 [1] : vector<8x256xf32> to vector<8xf32>
    %75 = vector.shape_cast %74 : vector<8xf32> to vector<8x1xf32>
    %76 = vector.broadcast %75 : vector<8x1xf32> to vector<8x256xf32>
    %77 = arith.subf %64, %76 : vector<8x256xf32>
    %78 = math.exp %77 : vector<8x256xf32>
    %cst_22 = arith.constant dense<0.000000e+00> : vector<8xf32>
    %79 = vector.multi_reduction <add>, %78, %cst_22 [1] : vector<8x256xf32> to vector<8xf32>
    %80 = vector.shape_cast %79 : vector<8xf32> to vector<8x1xf32>
    %81 = math.log %80 : vector<8x1xf32>
    %82 = arith.addf %75, %81 : vector<8x1xf32>
    %83 = arith.subf %64, %63 : vector<8x256xf32>
    %84 = arith.mulf %78, %83 : vector<8x256xf32>
    %cst_23 = arith.constant dense<0.000000e+00> : vector<8xf32>
    %85 = vector.multi_reduction <add>, %84, %cst_23 [1] : vector<8x256xf32> to vector<8xf32>
    %86 = vector.shape_cast %85 : vector<8xf32> to vector<8x1xf32>
    %87 = tpu.reciprocal %80 {approx = true} : vector<8x1xf32> -> vector<8x1xf32>
    %88 = arith.mulf %86, %87 : vector<8x1xf32>
    %89 = arith.subf %73, %82 : vector<8x1xf32>
    %90 = arith.addf %88, %89 : vector<8x1xf32>
    %c0_24 = arith.constant 0 : index
    %c0_25 = arith.constant 0 : index
    %91 = vector.load %arg6[%c0_24, %c0_25] : memref<1x1xf32, #tpu.memory_space<vmem>>, vector<1x1xf32>
    %92 = arith.addf %62, %90 : vector<8x1xf32>
    %93 = vector.shape_cast %92 : vector<8x1xf32> to vector<1x8x1xf32>
    %cst_26 = arith.constant dense<0.000000e+00> : vector<1xf32>
    %94 = vector.multi_reduction <add>, %93, %cst_26 [1, 2] : vector<1x8x1xf32> to vector<1xf32>
    %95 = vector.shape_cast %94 : vector<1xf32> to vector<1x1x1xf32>
    %96 = vector.extract %95[0, 0, 0] : f32 from vector<1x1x1xf32>
    %97 = vector.broadcast %96 : f32 to vector<1x1xf32>
    %98 = arith.addf %91, %97 : vector<1x1xf32>
    %c0_27 = arith.constant 0 : index
    %c0_28 = arith.constant 0 : index
    %99 = vector.load %arg6[%c0_27, %c0_28] : memref<1x1xf32, #tpu.memory_space<vmem>>, vector<1x1xf32>
    tpu.vector_store %arg6[%c0_27, %c0_28], %98 {strides = array<i32>} : memref<1x1xf32, #tpu.memory_space<vmem>>, vector<1x1xf32>,
    %c2_i32 = arith.constant 2 : i32
    %100 = arith.cmpi eq, %arg0, %c2_i32 : i32
    %101 = arith.extui %100 : i1 to i32
    %c0_i32_29 = arith.constant 0 : i32
    %102 = arith.cmpi ne, %101, %c0_i32_29 : i32
    scf.if %102 {
      %c0_30 = arith.constant 0 : index
      %c0_31 = arith.constant 0 : index
      %103 = vector.load %arg6[%c0_30, %c0_31] : memref<1x1xf32, #tpu.memory_space<vmem>>, vector<1x1xf32>
      %c0_32 = arith.constant 0 : index
      %104 = memref.load %arg1[%c0_32] : memref<1xf32, #tpu.memory_space<smem>>
      %cst_33 = arith.constant 2.000000e-01 : f32
      %105 = arith.mulf %104, %cst_33 : f32
      %106 = vector.broadcast %105 : f32 to vector<1x1xf32>
      %107 = arith.mulf %103, %106 : vector<1x1xf32>
      %c0_34 = arith.constant 0 : index
      %c0_35 = arith.constant 0 : index
      %108 = vector.load %arg6[%c0_34, %c0_35] : memref<1x1xf32, #tpu.memory_space<vmem>>, vector<1x1xf32>
      tpu.vector_store %arg6[%c0_34, %c0_35], %107 {strides = array<i32>} : memref<1x1xf32, #tpu.memory_space<vmem>>, vector<1x1xf32>,
    } else {
    }
    return
  }
  func.func @transform_0(%arg0: i32, %arg1: memref<1xf32, #tpu.memory_space<smem>>) -> (i32, i32) {
    %c0_i32 = arith.constant 0 : i32
    %c0_i32_0 = arith.constant 0 : i32
    return %arg0, %c0_i32 : i32, i32
  }
  func.func @transform_1(%arg0: i32, %arg1: memref<1xf32, #tpu.memory_space<smem>>) -> (i32, i32) {
    %c0_i32 = arith.constant 0 : i32
    %c0_i32_0 = arith.constant 0 : i32
    return %arg0, %c0_i32 : i32, i32
  }
  func.func @transform_2(%arg0: i32, %arg1: memref<1xf32, #tpu.memory_space<smem>>) -> (i32, i32) {
    %c0_i32 = arith.constant 0 : i32
    %c0_i32_0 = arith.constant 0 : i32
    return %arg0, %c0_i32 : i32, i32
  }
  func.func @transform_3(%arg0: i32, %arg1: memref<1xf32, #tpu.memory_space<smem>>) -> (i32, i32) {
    %c0_i32 = arith.constant 0 : i32
    %c0_i32_0 = arith.constant 0 : i32
    return %arg0, %c0_i32 : i32, i32
  }
  func.func @transform_4(%arg0: i32, %arg1: memref<1xf32, #tpu.memory_space<smem>>) -> (i32, i32) {
    %c0_i32 = arith.constant 0 : i32
    %c0_i32_0 = arith.constant 0 : i32
    %c0_i32_1 = arith.constant 0 : i32
    return %c0_i32, %c0_i32_0 : i32, i32
  }
}

</mosaic_0001>

<bundles_post_ra>
// kernel: tpu_custom_call.1
= control target key start
LH: loop header
LB: loop body
LE: loop exit
PB: predicated region body
PF: predicated region fallthrough
CT: control target
= control target key end

     0   :  { %s1175_s0 = inlined_call_operand.<no memory space> [shape: f32[1], index: 0, kind: input, shape index: {}]   ;;  %s1176_s1 = inlined_call_operand.hbm [shape: f32[20,256], index: 1, kind: input, shape index: {}]   ;;  %s1177_s2 = inlined_call_operand.hbm [shape: f32[20,256], index: 2, kind: input, shape index: {}]   ;;  %s1178_s3 = inlined_call_operand.hbm [shape: f32[20,256], index: 3, kind: input, shape index: {}]   ;;  %s1179_s4 = inlined_call_operand.hbm [shape: f32[20,256], index: 4, kind: input, shape index: {}]   ;;  %s1180_s5 = inlined_call_operand.hbm [shape: f32[1,1], index: 5, kind: output, shape index: {}]  }
   0x1   :  { %1182 = sst [smem:[#allocation17_spill]] %s1177_s2 }
   0x2   :  { %10 = sst [smem:[#allocation3]] %s1175_s0 }
   0x3   :  { %11 = vsyncpa [#allocation5], 0 }
   0x4   :  { %13 = vsyncpa [#allocation5 + $0x1], 0 }
   0x5   :  { %14 = vsyncpa [#allocation8], 0 }
   0x6   :  { %16 = vsyncpa [#allocation8 + $0x1], 0 }
   0x7   :  { %17 = vsyncpa [#allocation11], 0 }
   0x8   :  { %19 = vsyncpa [#allocation11 + $0x1], 0 }
   0x9   :  { %20 = vsyncpa [#allocation6], 0  ;;  %s937_s20 = smov 0   ;;  %s939_s21 = smov 0  }
   0xa   :  { %s941_s22 = smov 0   ;;  %s943_s23 = smov 0  }
   0xb LB: > { %s956_s0 = sadd.s32 4294967295, %s896_s23   ;;  %s959_s24 = sadd.s32 1, %s896_s23   ;;  %s896_s23 = sphi %s943_s23, %s1195_s23   ;;  %s892_s22 = sphi %s941_s22, %s1194_s22   ;;  %s888_s21 = sphi %s939_s21, %s1193_s21   ;;  %s884_s20 = sphi %s937_s20, %s1192_s20  }
   0xc   : > { %s30_s25 = ssub.s32 %s896_s23, %s959_s24  ;;  %s33_s26 = sadd.s32 1, %s892_s22 }
   0xd   : > { %p31_p0 = scmp.eq.s32.totalorder %s30_s25, 0  ;;  %p40_p1 = scmp.ne.s32.totalorder %s892_s22, %s888_s21 }
   0xe   : > { %p41_p2 = scmp.eq.s32.totalorder %s896_s23, 0  ;;  %p46_p3 = scmp.ne.s32.totalorder %s888_s21, %s884_s20 }
   0xf   : > { %s969_s27 = scalar_select %p31_p0, %s892_s22, %s33_s26  }
  0x10   : > { %p42_p4 = por %p41_p2, %p40_p1  ;;  %p47_p5 = scmp.eq.s32.totalorder %s956_s0, 0 }
  0x11   : > { %p649_p6 = scmp.lt.s32.totalorder %s896_s23, 3  ;;  %s978_s29 = sand.u32 1, %s892_s22  }
  0x12   : > { %p973_p7 = por %p47_p5, %p46_p3  ;;  %s981_s30 = sshll.u32 %s978_s29, 4 }
  0x13   : > { %s984_s6 = sshll.u32 %s896_s23, 8  ;;  %p986_p8 = pnand %p649_p6, %p42_p4 }
  0x14   : > { %s1183_s28 = scalar_select %p973_p7, 1, 0 }
  0x15   : > { %s188_s8 = sand.u32 1, %s896_s23   ;;  %s1185_s2 = sld [smem:[#allocation17_spill]] }
  0x16   : > { %s192_s12 = scalar_lea.vmem [#allocation7], %s981_s30  ;;  %s1000_s14 = scalar_lea.sflag [#allocation8], %s188_s8 }
  0x17   : > { %s200_s13 = sshll.u32 %s192_s12, 4  ;;  %p1006_p12 = pneg %p986_p8  ;;  %s201_s13 = int_to_ptr.vmem [resolvable:$true] %s200_s13 }
  0x1b   : > { %s995_s11 = scalar_lea.hbm %s1185_s2, %s984_s6  ;;  %s719_s19 = scalar_lea.hbm %s1185_s2, 768 }
  0x1c   : > { %s714_s15 = scalar_lea.hbm %s995_s11, 256  ;;  %p720_p1 = scmp.lt.s32.totalorder %s995_s11, %s1185_s2 }
  0x1d   : > { %p715_p11 = scmp.ne.s32.totalorder %s995_s11, %s714_s15  ;;  %p721_p2 = scmp.lt.s32.totalorder %s719_s19, %s714_s15 }
  0x1f   : > { %p717_p13 = pnand %p1006_p12, %p715_p11  ;;  %p722_p3 = por %p721_p2, %p720_p1 }
  0x21   : > { %p718_p0 = pneg %p717_p13 }
  0x23   : > { %p723_p4 = pnand %p722_p3, %p718_p0 }
  0x25   : > { %726 = shalt.err (!%p723_p4)
}
  0x26   : > { %s727_s26 = scalar_lea.vmem %s201_s13, 256  ;;  %s898_s8 = smov [#allocation7]  }
  0x27   : > { %p728_p5 = scmp.ne.s32.totalorder %s201_s13, %s727_s26  ;;  %s732_s9 = sshll.u32 %s898_s8, 4  ;;  %s733_s9 = int_to_ptr.vmem [resolvable:$false] %s732_s9 }
  0x28   : > { %s734_s10 = scalar_lea.vmem %s733_s9, 512  ;;  %p735_p11 = scmp.lt.s32.totalorder %s201_s13, %s733_s9 }
  0x29   : > { %p730_p6 = pnand %p728_p5, %p1006_p12  ;;  %p736_p13 = scmp.lt.s32.totalorder %s734_s10, %s727_s26 }
  0x2b   : > { %p731_p9 = pneg %p730_p6  ;;  %p737_p10 = por %p736_p13, %p735_p11 }
  0x2d   : > { %p738_p7 = pnand %p737_p10, %p731_p9 }
  0x2f   : > { %741 = shalt.err (!%p738_p7)
}
  0x30   : > { %642 = dma.hbm_to_vmem [thread:$0]  (!%p986_p8), %s995_s11, 256, %s201_s13, %s1000_s14  }
  0x31   : > { %p1187_p0 = scmp.lt.s32.totalorder %s896_s23, 4  ;;  %p1188_p1 = scmp.ge.s32.totalorder %s896_s23, 1 }
  0x32   : > { %s1037_s18 = scalar_lea.hbm %s1176_s1, %s984_s6  ;;  %s173_s19 = scalar_lea.vmem [#allocation4], %s981_s30 }
  0x33   : > { %p1029_p2 = pnand %p1188_p1, %p1187_p0  ;;  %s181_s20 = sshll.u32 %s173_s19, 4  ;;  %s182_s20 = int_to_ptr.vmem [resolvable:$true] %s181_s20 }
  0x34   : > { %s1044_s11 = scalar_lea.hbm %s1178_s3, %s984_s6  ;;  %s170_s23 = scalar_lea.sflag [#allocation5], %s978_s29 }
  0x35   : > { %s1189_s12 = scalar_select %p1029_p2, 1, 0 }
  0x36   : > { %s742_s13 = scalar_lea.hbm %s1037_s18, 256  ;;  %s747_s10 = scalar_lea.hbm %s1176_s1, 768 }
  0x37   : > { %p743_p7 = scmp.ne.s32.totalorder %s1037_s18, %s742_s13  ;;  %p748_p3 = scmp.lt.s32.totalorder %s1037_s18, %s1176_s1 }
  0x38   : > { %p749_p4 = scmp.lt.s32.totalorder %s747_s10, %s742_s13 }
  0x39   : > { %p745_p9 = pnand %p743_p7, %p1006_p12 }
  0x3a   : > { %p750_p5 = por %p749_p4, %p748_p3 }
  0x3b   : > { %p746_p10 = pneg %p745_p9 }
  0x3d   : > { %p751_p6 = pnand %p750_p5, %p746_p10 }
  0x3f   : > { %754 = shalt.err (!%p751_p6)
}
  0x40   : > { %s755_s19 = scalar_lea.vmem %s182_s20, 256  ;;  %s899_s25 = smov [#allocation4]  }
  0x41   : > { %p756_p11 = scmp.ne.s32.totalorder %s182_s20, %s755_s19  ;;  %s760_s26 = sshll.u32 %s899_s25, 4  ;;  %s761_s26 = int_to_ptr.vmem [resolvable:$false] %s760_s26 }
  0x42   : > { %s762_s2 = scalar_lea.vmem %s761_s26, 512  ;;  %p763_p1 = scmp.lt.s32.totalorder %s182_s20, %s761_s26 }
  0x43   : > { %p758_p13 = pnand %p756_p11, %p1006_p12  ;;  %p764_p7 = scmp.lt.s32.totalorder %s762_s2, %s755_s19 }
  0x45   : > { %p759_p0 = pneg %p758_p13  ;;  %p765_p9 = por %p764_p7, %p763_p1 }
  0x47   : > { %p766_p2 = pnand %p765_p9, %p759_p0 }
  0x49   : > { %769 = shalt.err (!%p766_p2)
}
  0x4a   : > { %639 = dma.hbm_to_vmem [thread:$0]  (!%p986_p8), %s1037_s18, 256, %s182_s20, %s170_s23  }
  0x4b   : > { %s211_s13 = scalar_lea.vmem [#allocation9], %s981_s30  ;;  %s770_s9 = scalar_lea.hbm %s1044_s11, 256 }
  0x4c   : > { %s219_s8 = sshll.u32 %s211_s13, 4  ;;  %p771_p10 = scmp.ne.s32.totalorder %s1044_s11, %s770_s9  ;;  %s220_s8 = int_to_ptr.vmem [resolvable:$true] %s219_s8 }
  0x4d   : > { %s775_s15 = scalar_lea.hbm %s1178_s3, 768  ;;  %p776_p2 = scmp.lt.s32.totalorder %s1044_s11, %s1178_s3 }
  0x4e   : > { %p773_p3 = pnand %p771_p10, %p1006_p12  ;;  %p777_p5 = scmp.lt.s32.totalorder %s775_s15, %s770_s9 }
  0x50   : > { %p774_p4 = pneg %p773_p3  ;;  %p778_p6 = por %p777_p5, %p776_p2 }
  0x52   : > { %p779_p11 = pnand %p778_p6, %p774_p4 }
  0x54   : > { %782 = shalt.err (!%p779_p11)
}
  0x55   : > { %s783_s18 = scalar_lea.vmem %s220_s8, 256  ;;  %s900_s20 = smov [#allocation9]  }
  0x56   : > { %p784_p13 = scmp.ne.s32.totalorder %s220_s8, %s783_s18  ;;  %s788_s23 = sshll.u32 %s900_s20, 4  ;;  %s789_s23 = int_to_ptr.vmem [resolvable:$false] %s788_s23 }
  0x57   : > { %s790_s25 = scalar_lea.vmem %s789_s23, 512  ;;  %p791_p7 = scmp.lt.s32.totalorder %s220_s8, %s789_s23 }
  0x58   : > { %p786_p0 = pnand %p784_p13, %p1006_p12  ;;  %p792_p9 = scmp.lt.s32.totalorder %s790_s25, %s783_s18 }
  0x5a   : > { %p787_p1 = pneg %p786_p0  ;;  %p793_p10 = por %p792_p9, %p791_p7 }
  0x5c   : > { %p794_p3 = pnand %p793_p10, %p787_p1 }
  0x5e   : > { %797 = shalt.err (!%p794_p3)
}
  0x5f   : > { %645 = dma.hbm_to_vmem [thread:$0]  (!%p986_p8), %s1044_s11, 256, %s220_s8, %s1000_s14  }
  0x60   : > { %s1085_s9 = scalar_lea.hbm %s1179_s4, %s984_s6  ;;  %s230_s2 = scalar_lea.vmem [#allocation10], %s981_s30 }
  0x61   : > { %s238_s10 = sshll.u32 %s230_s2, 4  ;;  %s227_s15 = scalar_lea.sflag [#allocation11], %s978_s29  ;;  %s239_s10 = int_to_ptr.vmem [resolvable:$true] %s238_s10 }
  0x62   : > { %s798_s17 = scalar_lea.hbm %s1085_s9, 256  ;;  %s803_s14 = scalar_lea.hbm %s1179_s4, 768 }
  0x63   : > { %p799_p4 = scmp.ne.s32.totalorder %s1085_s9, %s798_s17  ;;  %p804_p6 = scmp.lt.s32.totalorder %s1085_s9, %s1179_s4 }
  0x64   : > { %p805_p11 = scmp.lt.s32.totalorder %s803_s14, %s798_s17 }
  0x65   : > { %p801_p2 = pnand %p799_p4, %p1006_p12 }
  0x66   : > { %p806_p13 = por %p805_p11, %p804_p6 }
  0x67   : > { %p802_p5 = pneg %p801_p2 }
  0x69   : > { %p807_p0 = pnand %p806_p13, %p802_p5 }
  0x6b   : > { %810 = shalt.err (!%p807_p0)
}
  0x6c   : > { %s811_s30 = scalar_lea.vmem %s239_s10, 256  ;;  %s901_s29 = smov [#allocation10]  }
  0x6d   : > { %p812_p1 = scmp.ne.s32.totalorder %s239_s10, %s811_s30  ;;  %s816_s6 = sshll.u32 %s901_s29, 4  ;;  %s817_s6 = int_to_ptr.vmem [resolvable:$false] %s816_s6 }
  0x6e   : > { %s818_s20 = scalar_lea.vmem %s817_s6, 512  ;;  %p819_p10 = scmp.lt.s32.totalorder %s239_s10, %s817_s6 }
  0x6f   : > { %p814_p7 = pnand %p812_p1, %p1006_p12  ;;  %p820_p3 = scmp.lt.s32.totalorder %s818_s20, %s811_s30 }
  0x71   : > { %p815_p9 = pneg %p814_p7  ;;  %p821_p4 = por %p820_p3, %p819_p10 }
  0x73   : > { %p822_p2 = pnand %p821_p4, %p815_p9 }
  0x75   : > { %825 = shalt.err (!%p822_p2)
}
  0x76   : > { %648 = dma.hbm_to_vmem [thread:$0]  (!%p986_p8), %s1085_s9, 256, %s239_s10, %s227_s15  }
  0x77   : > { %p1190_p5 = scmp.ne.s32.totalorder %s1189_s12, 0 }
  0x78   : > { %s249_s16 = sand.u32 (!%p1190_p5), 1, %s888_s21   ;;  %p1191_p12 = scmp.ne.s32.totalorder (!%p1190_p5), %s1183_s28, 0 }
  0x79   : > { %247 = sbr.rel (%p1190_p5) target bundleno = 715 (0x2cb), region = 36  ;;  %s1108_s23 = sshll.u32 (!%p1190_p5), %s249_s16, 4 }
  0x7a   : > { %s250_s25 = scalar_lea.sflag (!%p1190_p5), [#allocation5], %s249_s16  ;;  %s253_s26 = scalar_lea.vmem (!%p1190_p5), [#allocation4], %s1108_s23 }
  0x7e   : > { %867 = dma.done.wait (%p1191_p12), %s250_s25, 256  }
  0x7f   : > { %869 = vsyncadd (%p1191_p12), %s250_s25, 4294967040  ;;  %s258_s7 = sand.u32 1, %s956_s0   ;;  %s262_s12 = scalar_lea.vmem [#allocation7], %s1108_s23 }
  0x80   : > { %s259_s13 = scalar_lea.sflag [#allocation8], %s258_s7 }
  0x81   : > { %871 = dma.done.wait (%p1191_p12), %s259_s13, 512  }
  0x82   : > { %873 = vsyncadd (%p1191_p12), %s259_s13, 4294966784  ;;  %s271_s9 = scalar_lea.vmem [#allocation9], %s1108_s23  ;;  %s277_s2 = scalar_lea.sflag [#allocation11], %s249_s16 }
  0x83   : > { %s280_s10 = scalar_lea.vmem [#allocation10], %s1108_s23 }
  0x84   : > { %875 = dma.done.wait (%p1191_p12), %s277_s2, 256  }
  0x85   : > { %877 = vsyncadd (%p1191_p12), %s277_s2, 4294967040  ;;  %p611_p8 = scmp.ne.s32.totalorder %s956_s0, 0 }
  0x87   : > { %318 = sbr.rel (%p611_p8) target bundleno = 142 (0x8e), region = 56 }
  0x8c   : > { %vm319_vm0 = vcmask 0   ;;  %v902_v0 = vmov 0.0  }
  0x8d   : > { %320 = vst.msk [vmem:[#allocation12] sm:$0x1] %vm319_vm0, %v902_v0 }
  0x8e PF: > { %s612_s15 = sshll.u32 %s956_s0, 3  ;;  %v330_v1 = vlaneseq  ;;  %v321_v4 = vld [vmem:[%s253_s26] sm:$0xff]  ;;  %v322_v5 = vld [vmem:[%s253_s26 + $0x8] sm:$0xff]  ;;  %vm443_vm2 = vcmask 7168   ;;  %vm456_vm3 = vcmask 0   ;;  %p613_p6 = scmp.ne.s32.totalorder %s956_s0, 2 }
  0x8f   : > { %v332_v2 = vstv %s612_s15  ;;  %v325_v6 = vld [vmem:[%s271_s9] sm:$0xff]  ;;  %v326_v7 = vld [vmem:[%s271_s9 + $0x8] sm:$0xff]  ;;  %s463_s17 = sld [smem:[#allocation3]] (!%p613_p6) }
  0x90   : > { %v331_v3 = vshrl.u32 %v330_v1, 7  ;;  %v323_v9 = vld [vmem:[%s262_s12] sm:$0xff]  ;;  %v324_v10 = vld [vmem:[%s262_s12 + $0x8] sm:$0xff] }
  0x91   : > { %v327_v11 = vld [vmem:[%s280_s10] sm:$0xff]  ;;  %v328_v12 = vld [vmem:[%s280_s10 + $0x8] sm:$0xff] }
  0x92   : > { %v333_v8 = vadd.s32 %v332_v2, %v331_v3 }
  0x94   : > { %vm334_vm1 = vcmp.lt.s32.totalorder %v333_v8, 20 }
  0x95   : > { %v337_v13 = vsel %vm334_vm1, %v321_v4, 0.0  ;;  %v338_v14 = vsel %vm334_vm1, %v322_v5, 0.0  ;;  %v341_v15 = vsel %vm334_vm1, %v325_v6, 0.0  ;;  %v342_v16 = vsel %vm334_vm1, %v326_v7, 0.0  ;;  %s464_s19 = smul.f32 (!%p613_p6), 0.2, %s463_s17 }
  0x96   : > { %v345_v17 = vmul.f32 0.5, %v341_v15  ;;  %v346_v18 = vmul.f32 0.5, %v342_v16  ;;  %v347_v19 = vsub.f32 1.0, %v341_v15  ;;  %v348_v20 = vsub.f32 1.0, %v342_v16 }
  0x97   : > { %v339_v21 = vsel %vm334_vm1, %v323_v9, 0.0  ;;  %v340_v22 = vsel %vm334_vm1, %v324_v10, 0.0  ;;  %v343_v23 = vsel %vm334_vm1, %v327_v11, 0.0  ;;  %v344_v24 = vsel %vm334_vm1, %v328_v12, 0.0 }
  0x98   : > { %v351_v25 = vmul.f32 %v345_v17, %v337_v13  ;;  %v352_v26 = vmul.f32 %v346_v18, %v338_v14  ;;  %v349_v27 = vmul.f32 0.5, %v347_v19  ;;  %v350_v28 = vmul.f32 0.5, %v348_v20 }
  0x99   : > { %v353_v29 = vmul.f32 %v345_v17, %v339_v21  ;;  %v354_v30 = vmul.f32 %v346_v18, %v340_v22 }
  0x9a   : > { %v355_v31 = vmax.f32 %v351_v25, %v352_v26  ;;  %v396_v32 = vmul.f32 %v349_v27, %v337_v13  ;;  %v397_v33 = vmul.f32 %v350_v28, %v338_v14  ;;  %v398_v34 = vmul.f32 %v349_v27, %v343_v23 }
  0x9b   : > { %v399_v35 = vmul.f32 %v350_v28, %v344_v24  ;;  %v370_v37 = vmax.f32 %v353_v29, %v354_v30  ;;  %v385_v63 = vsub.f32 %v353_v29, %v351_v25  ;;  %v386_v0 = vsub.f32 %v354_v30, %v352_v26 }
  0x9c   : > { %356 = vmax.xlane.f32.xlu0 %v355_v31  ;;  %v400_v36 = vmax.f32 %v396_v32, %v397_v33  ;;  %v430_v5 = vsub.f32 %v398_v34, %v396_v32 }
  0x9d   : > { %v415_v38 = vmax.f32 %v398_v34, %v399_v35  ;;  %v431_v10 = vsub.f32 %v399_v35, %v397_v33 }
  0x9e   : > { %401 = vmax.xlane.f32.xlu1 %v400_v36 }
  0xa0   : > { %371 = vmax.xlane.f32.xlu0 %v370_v37 }
  0xa2   : > { %416 = vmax.xlane.f32.xlu1 %v415_v38 }
 0x125   : > { %v1129_v39 = vpop.xlane.xlu0 %356 }
 0x126   : > { %v358_v40 = vsub.f32 %v351_v25, %v1129_v39  ;;  %v359_v41 = vsub.f32 %v352_v26, %v1129_v39 }
 0x127   : > { %v1133_v42 = vpop.xlane.xlu1 %401 }
 0x128   : > { %v360_v43 = vmul.f32 1.442695, %v358_v40  ;;  %v362_v44 = vmul.f32 1.442695, %v359_v41  ;;  %v403_v45 = vsub.f32 %v396_v32, %v1133_v42  ;;  %v404_v46 = vsub.f32 %v397_v33, %v1133_v42 }
 0x129   : > { %v1137_v47 = vpop.xlane.xlu0 %371 }
 0x12a   : > { %686 = vpow2.f32 %v360_v43  ;;  %v405_v48 = vmul.f32 1.442695, %v403_v45  ;;  %v407_v49 = vmul.f32 1.442695, %v404_v46  ;;  %v373_v50 = vsub.f32 %v353_v29, %v1137_v47 }
 0x12b   : > { %688 = vpow2.f32 %v362_v44  ;;  %v374_v51 = vsub.f32 %v354_v30, %v1137_v47  ;;  %v1141_v52 = vpop.xlane.xlu1 %416 }
 0x12c   : > { %690 = vpow2.f32 %v405_v48  ;;  %v375_v53 = vmul.f32 1.442695, %v373_v50  ;;  %v418_v54 = vsub.f32 %v398_v34, %v1141_v52  ;;  %v419_v55 = vsub.f32 %v399_v35, %v1141_v52 }
 0x12d   : > { %692 = vpow2.f32 %v407_v49  ;;  %v377_v56 = vmul.f32 1.442695, %v374_v51 }
 0x12e   : > { %694 = vpow2.f32 %v375_v53  ;;  %v420_v57 = vmul.f32 1.442695, %v418_v54  ;;  %v422_v58 = vmul.f32 1.442695, %v419_v55 }
 0x12f   : > { %696 = vpow2.f32 %v377_v56 }
 0x130   : > { %698 = vpow2.f32 %v420_v57 }
 0x131   : > { %700 = vpow2.f32 %v422_v58 }
 0x137   : > { %v687_v59 = vpop.eup %686 }
 0x138   : > { %v689_v60 = vpop.eup %688 }
 0x139   : > { %v691_v61 = vpop.eup %690  ;;  %v364_v62 = vadd.f32 %v689_v60, %v687_v59 }
 0x13a   : > { %v693_v1 = vpop.eup %692 }
 0x13b   : > { %v695_v2 = vpop.eup %694  ;;  %365 = vadd.xlane.f32.xlu0 %v364_v62  ;;  %v409_v3 = vadd.f32 %v693_v1, %v691_v61 }
 0x13c   : > { %v697_v4 = vpop.eup %696  ;;  %v387_v8 = vmul.f32 %v695_v2, %v385_v63 }
 0x13d   : > { %v699_v6 = vpop.eup %698  ;;  %v379_v7 = vadd.f32 %v697_v4, %v695_v2  ;;  %v388_v9 = vmul.f32 %v697_v4, %v386_v0 }
 0x13e   : > { %v701_v11 = vpop.eup %700  ;;  %v432_v14 = vmul.f32 %v699_v6, %v430_v5 }
 0x13f   : > { %410 = vadd.xlane.f32.xlu0 %v409_v3  ;;  %380 = vadd.xlane.f32.xlu1 %v379_v7  ;;  %v424_v12 = vadd.f32 %v701_v11, %v699_v6  ;;  %v389_v13 = vadd.f32 %v388_v9, %v387_v8  ;;  %v433_v15 = vmul.f32 %v701_v11, %v431_v10 }
 0x141   : > { %v434_v16 = vadd.f32 %v433_v15, %v432_v14 }
 0x143   : > { %390 = vadd.xlane.f32.xlu0 %v389_v13  ;;  %425 = vadd.xlane.f32.xlu1 %v424_v12 }
 0x147   : > { %435 = vadd.xlane.f32.xlu1 %v434_v16 }
 0x1c4   : > { %v366_v17 = vpop.xlane.xlu0 %365 }
 0x1c5   : > { %702 = vlog2.f32 %v366_v17 }
 0x1c8   : > { %v381_v18 = vpop.xlane.xlu1 %380  ;;  %v411_v19 = vpop.xlane.xlu0 %410 }
 0x1c9   : > { %704 = vlog2.f32 %v381_v18 }
 0x1ca   : > { %706 = vlog2.f32 %v411_v19 }
 0x1cc   : > { %v426_v20 = vpop.xlane.xlu1 %425  ;;  %v391_v36 = vpop.xlane.xlu0 %390 }
 0x1cd   : > { %708 = vlog2.f32 %v426_v20 }
 0x1ce   : > { %710 = vrcp.f32 %v381_v18 }
 0x1cf   : > { %712 = vrcp.f32 %v426_v20 }
 0x1d0   : > { %v436_v37 = vpop.xlane.xlu1 %435 }
 0x1d2   : > { %v703_v21 = vpop.eup %702 }
 0x1d3   : > { %v368_v23 = vmul.f32 0.6931472, %v703_v21 }
 0x1d5   : > { %v369_v30 = vadd.f32 %v368_v23, %v1129_v39 }
 0x1d6   : > { %v705_v22 = vpop.eup %704 }
 0x1d7   : > { %v383_v24 = vmul.f32 0.6931472, %v705_v22  ;;  %v707_v25 = vpop.eup %706 }
 0x1d8   : > { %v413_v26 = vmul.f32 0.6931472, %v707_v25 }
 0x1d9   : > { %v384_v27 = vadd.f32 %v383_v24, %v1137_v47 }
 0x1da   : > { %v709_v28 = vpop.eup %708  ;;  %v414_v33 = vadd.f32 %v413_v26, %v1133_v42 }
 0x1db   : > { %v711_v29 = vpop.eup %710  ;;  %v428_v31 = vmul.f32 0.6931472, %v709_v28  ;;  %v394_v34 = vsub.f32 %v369_v30, %v384_v27 }
 0x1dc   : > { %v713_v32 = vpop.eup %712  ;;  %v393_v38 = vmul.f32 %v711_v29, %v391_v36 }
 0x1dd   : > { %v429_v35 = vadd.f32 %v428_v31, %v1141_v52  ;;  %v438_v40 = vmul.f32 %v713_v32, %v436_v37  ;;  %v441_v52 = vld [vmem:[#allocation12] sm:$0x1] }
 0x1de   : > { %v395_v43 = vadd.f32 %v394_v34, %v393_v38 }
 0x1df   : > { %v439_v41 = vsub.f32 %v414_v33, %v429_v35 }
 0x1e1   : > { %v440_v44 = vadd.f32 %v439_v41, %v438_v40 }
 0x1e3   : > { %v442_v45 = vadd.f32 %v440_v44, %v395_v43 }
 0x1e5   : > { %v444_v46 = vsel %vm443_vm2, %v442_v45, 0.0 }
 0x1e6   : > { %445 = vadd.xlane.f32.xlu0 %v444_v46 }
 0x26f   : > { %v446_v47 = vpop.xlane.xlu0 %445 }
 0x270   : > { %v447_v39 = vrot.slane %v446_v47, 4 }
 0x272   : > { %v448_v48 = vadd.f32 %v447_v39, %v446_v47 }
 0x274   : > { %v449_v49 = vrot.slane %v448_v48, 2 }
 0x276   : > { %v450_v50 = vadd.f32 %v449_v49, %v448_v48 }
 0x278   : > { %v451_v42 = vrot.slane %v450_v50, 1 }
 0x27a   : > { %v452_v51 = vadd.f32 %v451_v42, %v450_v50 }
 0x27c   : > { %622 = vpush %v452_v51 }
 0x2ad   : > { %s623_s28 = spop %622  ;;  %461 = sbr.rel (%p613_p6) target bundleno = 700 (0x2bc), region = 60 }
 0x2ae   : > { %v454_v53 = vstv %s623_s28 }
 0x2af   : > { %v455_v54 = vadd.f32 %v454_v53, %v441_v52 }
 0x2b1   : > { %457 = vst.msk [vmem:[#allocation12] sm:$0x1] %vm456_vm3, %v455_v54 }
 0x2b2   : > { %v465_v56 = vstv %s464_s19 }
 0x2b8   : > { %v462_v55 = vld [vmem:[#allocation12] sm:$0x1] }
 0x2b9   : > { %v466_v57 = vmul.f32 %v465_v56, %v462_v55 }
 0x2bb   : > { %467 = vst.msk [vmem:[#allocation12] sm:$0x1] %vm456_vm3, %v466_v57 }
 0x2bc PF: > { %p650_p11 = scmp.eq.s32.totalorder %s956_s0, 2  ;;  %s903_s18 = smov [#allocation12]  }
 0x2bd   : > { %s475_s14 = sshll.u32 %s903_s18, 4  ;;  %s476_s14 = int_to_ptr.vmem [resolvable:$true] %s475_s14 }
 0x2be   : > { %s826_s11 = scalar_lea.vmem %s476_s14, 16  ;;  %s832_s8 = scalar_lea.vmem %s476_s14, 32 }
 0x2bf   : > { %p827_p13 = scmp.ne.s32.totalorder %s476_s14, %s826_s11  ;;  %p833_p7 = scmp.lt.s32.totalorder %s476_s14, %s476_s14 }
 0x2c0   : > { %p834_p9 = scmp.lt.s32.totalorder %s832_s8, %s826_s11 }
 0x2c1   : > { %p828_p0 = pnand %p827_p13, %p650_p11 }
 0x2c2   : > { %p835_p10 = por %p834_p9, %p833_p7 }
 0x2c3   : > { %p829_p1 = pneg %p828_p0 }
 0x2c5   : > { %p836_p3 = pnand %p835_p10, %p829_p1 }
 0x2c7   : > { %839 = shalt.err (!%p836_p3)
}
 0x2c8   : > { %633 = dma.vmem_to_hbm [thread:$0]  (%p650_p11), %s476_s14, 16, %s1180_s5, [#allocation6]  }
 0x2c9   : > { %879 = dma.done.wait (%p650_p11), [#allocation6], 16  }
 0x2ca   : > { %881 = vsyncadd (%p650_p11), [#allocation6], 4294967280 }
 0x2cb PF: > { %p23_p4 = scmp.ge.s32.totalorder %s959_s24, 5   ;;  %s1192_s20 = smov %s888_s21 }
 0x2cc   : > { %s1193_s21 = smov %s892_s22  ;;  %s1194_s22 = smov %s969_s27 }
 0x2cd   : > { %s1195_s23 = smov %s959_s24  ;;  %25 = sbr.rel (!%p23_p4) target bundleno = 11 (0xb), region = 118 }
 0x2d2   :  { %488 = vsyncpa [#allocation5], 1 }
 0x2d3   :  { %490 = vsyncpa [#allocation5 + $0x1], 1 }
 0x2d4   :  { %491 = vsyncpa [#allocation8], 1 }
 0x2d5   :  { %493 = vsyncpa [#allocation8 + $0x1], 1 }
 0x2d6   :  { %494 = vsyncpa [#allocation11], 1 }
 0x2d7   :  { %496 = vsyncpa [#allocation11 + $0x1], 1 }
 0x2d8   :  { %497 = vsyncpa [#allocation6], 1 }
 0x2d9   :  { %499 = vsyncpa [#allocation6 + $0x1], 1 }

</bundles_post_ra>
